<compile_context>
chip_gen: v7x
topology: tpu7x:2x2x1
jax: 0.10.0
libtpu: 0.0.40
codegen_flags: <defaults>
</compile_context>

<pallas_src>
import math
import numpy as np
import jax
import jax.numpy as jnp
from jax.experimental import pallas as pl
from jax.experimental.pallas import tpu as pltpu

_LANES = 128                       # vreg lane width (fast axis)
_SUBLANES = 8                      # vreg sublane count
_TARGET_BLOCK_BYTES = 2 * 1024 * 1024   # ~2 MiB per input block (large inputs)
_SINGLE_BLOCK_BYTES = 256 * 1024        # below this/input -> one grid step
_MIN_GRID_STEPS = 4                     # keep pipeline + both v7x cores busy


def _add_kernel(a_ref, b_ref, o_ref):
    # jnp broadcasting covers both (bm,128)+(bm,128) and (bm,128)+(1,1).
    o_ref[...] = a_ref[...] + b_ref[...]


def add_pallas(x):
    """ADD.forward: x[0] + x[1].

    `x` may be a stacked array with leading dim >= 2, or a list/tuple of two
    (broadcast-compatible) arrays — the usual PyTorch usage of this module.
    """
    a = jnp.asarray(x[0])
    b = jnp.asarray(x[1])
    out_dtype = jnp.result_type(a, b)
    out_shape = jnp.broadcast_shapes(a.shape, b.shape)
    size = math.prod(out_shape) if out_shape else 1

    if size == 0:
        return jnp.zeros(out_shape, out_dtype)

    a = a.astype(out_dtype)
    b = b.astype(out_dtype)

    # Keep a size-1 operand tiny: broadcast it inside the kernel (free on the
    # VPU) instead of materializing a full-size HBM stream for it.
    if a.size == 1 and b.size != 1:
        a, b = b, a
    b_scalar = (b.size == 1) and (size > 1)

    if a.shape != out_shape:
        a = jnp.broadcast_to(a, out_shape)          # general-broadcast fallback
    if (not b_scalar) and b.shape != out_shape:
        b = jnp.broadcast_to(b, out_shape)          # general-broadcast fallback

    # ---- lane-dense (rows, 128) view -------------------------------------
    a_flat = a.reshape(-1)
    b_flat = None if b_scalar else b.reshape(-1)
    lane_pad = (-size) % _LANES
    if lane_pad:
        # Only triggers when numel % 128 != 0 (not the case for typical conv
        # feature maps).  jnp.pad materializes a copy of the operands.
        # TODO(synk): split off the <128-element tail instead of padding.
        a_flat = jnp.pad(a_flat, (0, lane_pad))
        if b_flat is not None:
            b_flat = jnp.pad(b_flat, (0, lane_pad))
    rows = (size + lane_pad) // _LANES
    a2 = a_flat.reshape(rows, _LANES)
    b2 = b.reshape(1, 1) if b_scalar else b_flat.reshape(rows, _LANES)

    # ---- tiling policy ----------------------------------------------------
    itemsize = jnp.dtype(out_dtype).itemsize
    row_bytes = _LANES * itemsize
    input_bytes = rows * row_bytes

    if input_bytes <= _SINGLE_BLOCK_BYTES or rows <= _SUBLANES * _MIN_GRID_STEPS:
        # Tiny problem: one grid step, whole array as one block.
        block_rows, grid_rows = rows, 1
    else:
        # ~2 MiB input blocks, but guarantee >= _MIN_GRID_STEPS grid steps so
        # the pipeline overlaps DMAs and v7x's two TensorCores both get work.
        tgt = max(_SUBLANES,
                  (_TARGET_BLOCK_BYTES // row_bytes) // _SUBLANES * _SUBLANES)
        cap = pl.cdiv(rows, _MIN_GRID_STEPS)
        cap = max(_SUBLANES, pl.cdiv(cap, _SUBLANES) * _SUBLANES)
        block_rows = min(tgt, cap)
        grid_rows = pl.cdiv(rows, block_rows)       # ragged last block is OK

    block_bytes = block_rows * row_bytes
    # 3 streams (2 in + 1 out) x 2 buffers x block + headroom; clamp so it is
    # valid on every generation (v7x physical VMEM is only 64 MiB).
    vmem_limit = int(min(48 << 20, max(16 << 20, 6 * block_bytes + (2 << 20))))

    if b_scalar:
        b_spec = pl.BlockSpec((1, 1), lambda i: (0, 0))
    else:
        b_spec = pl.BlockSpec((block_rows, _LANES), lambda i: (i, 0))

    out2 = pl.pallas_call(
        _add_kernel,
        out_shape=jax.ShapeDtypeStruct((rows, _LANES), out_dtype),
        grid_spec=pl.GridSpec(
            grid=(grid_rows,),
            in_specs=[pl.BlockSpec((block_rows, _LANES), lambda i: (i, 0)),
                      b_spec],
            out_specs=pl.BlockSpec((block_rows, _LANES), lambda i: (i, 0)),
        ),
        compiler_params=pltpu.CompilerParams(
            dimension_semantics=("parallel",),
            vmem_limit_bytes=vmem_limit),
        cost_estimate=pl.CostEstimate(
            flops=size, transcendentals=0,
            bytes_accessed=int(3 * size * itemsize)),
    )(a2, b2)

    if lane_pad:
        return out2.reshape(-1)[:size].reshape(out_shape)
    return out2.reshape(out_shape)


if __name__ == "__main__":
    key = jax.random.PRNGKey(0)

    # Main case: `x` stacks the two operands of the ADD module: x[0] + x[1].
    x = jax.random.normal(key, (2, 4, 16, 16), dtype=jnp.float32)
    out = jax.block_until_ready(add_pallas(x))
    ref = jax.block_until_ready(x[0] + x[1])
    assert out.shape == ref.shape
    np.testing.assert_allclose(np.asarray(out), np.asarray(ref),
                               rtol=1e-6, atol=1e-6)

    # Ragged lane count (numel % 128 != 0) — exercises the padded fallback.
    k1, k2, k3, k4 = jax.random.split(key, 4)
    a1 = jax.random.normal(k1, (3, 5, 7), dtype=jnp.float32)
    b1 = jax.random.normal(k2, (3, 5, 7), dtype=jnp.float32)
    np.testing.assert_allclose(np.asarray(add_pallas([a1, b1])),
                               np.asarray(a1 + b1), rtol=1e-6, atol=1e-6)

    # Scalar + tensor — exercises the in-kernel broadcast path.
    s = jax.random.normal(k3, (), dtype=jnp.float32)
    a2_ = x[0]
    np.testing.assert_allclose(np.asarray(add_pallas([a2_, s])),
                               np.asarray(a2_ + s), rtol=1e-6, atol=1e-6)

    # Multi-step grid with a ragged last block — exercises the tiled path.
    a3 = jax.random.normal(k4, (700, 512), dtype=jnp.float32)
    b3 = jax.random.normal(k1, (700, 512), dtype=jnp.float32)
    np.testing.assert_allclose(np.asarray(add_pallas([a3, b3])),
                               np.asarray(a3 + b3), rtol=1e-6, atol=1e-6)

    print("KERNEL_OK")
</pallas_src>

<mosaic_0001>
module attributes {stable_mosaic.version = 11 : i64} {
  func.func @_add_kernel(%arg0: i32, %arg1: memref<8x128xf32, #tpu.memory_space<vmem>>, %arg2: memref<8x128xf32, #tpu.memory_space<vmem>>, %arg3: memref<8x128xf32, #tpu.memory_space<vmem>>) attributes {dimension_semantics = [#tpu.dimension_semantics<parallel>], iteration_bounds = array<i64: 1>, scalar_prefetch = 0 : i64, scratch_operands = 0 : i64, tpu.core_type = #tpu.core_type<tc>, window_params = [{transform_indices = @transform_0, window_bounds = array<i64: 8, 128>}, {transform_indices = @transform_1, window_bounds = array<i64: 8, 128>}, {transform_indices = @transform_2, window_bounds = array<i64: 8, 128>}]} {
    %c0 = arith.constant 0 : index
    %c0_0 = arith.constant 0 : index
    %0 = vector.load %arg1[%c0, %c0_0] : memref<8x128xf32, #tpu.memory_space<vmem>>, vector<8x128xf32>
    %c0_1 = arith.constant 0 : index
    %c0_2 = arith.constant 0 : index
    %1 = vector.load %arg2[%c0_1, %c0_2] : memref<8x128xf32, #tpu.memory_space<vmem>>, vector<8x128xf32>
    %2 = arith.addf %0, %1 : vector<8x128xf32>
    %c0_3 = arith.constant 0 : index
    %c0_4 = arith.constant 0 : index
    %3 = vector.load %arg3[%c0_3, %c0_4] : memref<8x128xf32, #tpu.memory_space<vmem>>, vector<8x128xf32>
    tpu.vector_store %arg3[%c0_3, %c0_4], %2 {strides = array<i32>} : memref<8x128xf32, #tpu.memory_space<vmem>>, vector<8x128xf32>,
    return
  }
  func.func @transform_0(%arg0: i32) -> (i32, i32) {
    %c0_i32 = arith.constant 0 : i32
    %c0_i32_0 = arith.constant 0 : i32
    return %arg0, %c0_i32 : i32, i32
  }
  func.func @transform_1(%arg0: i32) -> (i32, i32) {
    %c0_i32 = arith.constant 0 : i32
    %c0_i32_0 = arith.constant 0 : i32
    return %arg0, %c0_i32 : i32, i32
  }
  func.func @transform_2(%arg0: i32) -> (i32, i32) {
    %c0_i32 = arith.constant 0 : i32
    %c0_i32_0 = arith.constant 0 : i32
    return %arg0, %c0_i32 : i32, i32
  }
}

</mosaic_0001>

<bundles_post_ra>
// kernel: tpu_custom_call.1
= control target key start
LH: loop header
LB: loop body
LE: loop exit
PB: predicated region body
PF: predicated region fallthrough
CT: control target
= control target key end

     0   :  { %7 = vsyncpa [#allocation3], 0  ;;  %s185_s0 = inlined_call_operand.hbm [shape: f32[8,128], index: 0, kind: input, shape index: {}]   ;;  %s186_s1 = inlined_call_operand.hbm [shape: f32[8,128], index: 1, kind: input, shape index: {}]   ;;  %s187_s2 = inlined_call_operand.hbm [shape: f32[8,128], index: 2, kind: output, shape index: {}]  }
   0x1   :  { %8 = vsyncpa [#allocation6], 0 }
   0x2   :  { %9 = vsyncpa [#allocation4], 0  ;;  %s131_s9 = smov [#allocation2]   ;;  %s132_s11 = smov [#allocation5]  }
   0x3   :  { %s16_s10 = sshll.u32 %s131_s9, 4  ;;  %s26_s12 = sshll.u32 %s132_s11, 4  ;;  %s17_s10 = int_to_ptr.vmem [resolvable:$true] %s16_s10  ;;  %s27_s12 = int_to_ptr.vmem [resolvable:$true] %s26_s12 }
   0x4   :  { %s59_s15 = scalar_lea.hbm %s185_s0, 128 }
   0x5   :  { %p60_p0 = scmp.ne.s32.totalorder %s185_s0, %s59_s15  ;;  %p63_p1 = scmp.lt.u32.totalorder %s59_s15, %s185_s0 }
   0x7   :  { %p65_p2 = pnand %p63_p1, %p60_p0 }
   0x9   :  { %68 = shalt.err (!%p65_p2)
}
   0xa   :  { %s69_s20 = scalar_lea.vmem %s17_s10, 128  ;;  %p74_p4 = scmp.lt.s32.totalorder %s17_s10, %s17_s10 }
   0xb   :  { %p70_p3 = scmp.ne.s32.totalorder %s17_s10, %s69_s20  ;;  %p75_p5 = scmp.lt.s32.totalorder %s69_s20, %s69_s20 }
   0xd   :  { %p76_p6 = por %p75_p5, %p74_p4 }
   0xf   :  { %p77_p7 = pnand %p76_p6, %p70_p3 }
  0x11   :  { %80 = shalt.err (!%p77_p7)
}
  0x12   :  { %19 = dma.hbm_to_vmem [thread:$0]  %s185_s0, 128, %s17_s10, [#allocation3]  }
  0x13   :  { %s81_s25 = scalar_lea.hbm %s186_s1, 128 }
  0x14   :  { %p82_p8 = scmp.ne.s32.totalorder %s186_s1, %s81_s25  ;;  %p85_p9 = scmp.lt.u32.totalorder %s81_s25, %s186_s1 }
  0x16   :  { %p87_p10 = pnand %p85_p9, %p82_p8 }
  0x18   :  { %90 = shalt.err (!%p87_p10)
}
  0x19   :  { %s91_s30 = scalar_lea.vmem %s27_s12, 128  ;;  %p96_p12 = scmp.lt.s32.totalorder %s27_s12, %s27_s12 }
  0x1a   :  { %p92_p11 = scmp.ne.s32.totalorder %s27_s12, %s91_s30  ;;  %p97_p13 = scmp.lt.s32.totalorder %s91_s30, %s91_s30 }
  0x1c   :  { %p98_p0 = por %p97_p13, %p96_p12 }
  0x1e   :  { %p99_p1 = pnand %p98_p0, %p92_p11 }
  0x20   :  { %102 = shalt.err (!%p99_p1)
}
  0x21   :  { %29 = dma.hbm_to_vmem [thread:$0]  %s186_s1, 128, %s27_s12, [#allocation6]  }
  0x22   :  { %125 = dma.done.wait [#allocation3], 128  }
  0x23   :  { %126 = vsyncadd [#allocation3], 4294967168 }
  0x24   :  { %127 = dma.done.wait [#allocation6], 128  }
  0x25   :  { %128 = vsyncadd [#allocation6], 4294967168  ;;  %s133_s4 = smov [#allocation7]   ;;  %v36_v0 = vld [vmem:[#allocation2] sm:$0xff]  ;;  %v37_v1 = vld [vmem:[#allocation5] sm:$0xff] }
  0x26   :  { %s46_s5 = sshll.u32 %s133_s4, 4  ;;  %v38_v2 = vadd.f32 %v37_v1, %v36_v0  ;;  %s47_s5 = int_to_ptr.vmem [resolvable:$true] %s46_s5 }
  0x27   :  { %s103_s6 = scalar_lea.vmem %s47_s5, 128  ;;  %p108_p3 = scmp.lt.s32.totalorder %s47_s5, %s47_s5 }
  0x28   :  { %39 = vst [vmem:[#allocation7] sm:$0xff] %v38_v2  ;;  %p104_p2 = scmp.ne.s32.totalorder %s47_s5, %s103_s6  ;;  %p109_p4 = scmp.lt.s32.totalorder %s103_s6, %s103_s6 }
  0x2a   :  { %p110_p5 = por %p109_p4, %p108_p3 }
  0x2c   :  { %p111_p6 = pnand %p110_p5, %p104_p2 }
  0x2e   :  { %114 = shalt.err (!%p111_p6)
}
  0x2f   :  { %s115_s8 = scalar_lea.hbm %s187_s2, 128 }
  0x30   :  { %p116_p7 = scmp.ne.s32.totalorder %s187_s2, %s115_s8  ;;  %p119_p8 = scmp.lt.u32.totalorder %s115_s8, %s187_s2 }
  0x32   :  { %p121_p9 = pnand %p119_p8, %p116_p7 }
  0x34   :  { %124 = shalt.err (!%p121_p9)
}
  0x35   :  { %49 = dma.vmem_to_hbm [thread:$0]  %s47_s5, 128, %s187_s2, [#allocation4]  }
  0x36   :  { %129 = dma.done.wait [#allocation4], 128  }
  0x37   :  { %130 = vsyncadd [#allocation4], 4294967168 }
  0x38   :  { %53 = vsyncpa [#allocation3], 1 }
  0x39   :  { %54 = vsyncpa [#allocation6], 1 }
  0x3a   :  { %55 = vsyncpa [#allocation4], 1 }

</bundles_post_ra>
